<compile_context>
chip_gen: v7x
topology: tpu7x:2x2x1
jax: 0.10.0
libtpu: 0.0.40
codegen_flags: <defaults>
</compile_context>

<pallas_src>
import jax
import jax.numpy as jnp
from jax.experimental import pallas as pl
from jax.experimental.pallas import tpu as pltpu

BN_EPS = 1e-5
LANE = 128


def _linear_block_kernel(x_ref, wt_ref, params_ref, o_ref):
    # ---- fc: (N, in_f) @ (in_f, TN) on the MXU, f32 accumulation ----
    y = jnp.dot(x_ref[...], wt_ref[...], preferred_element_type=jnp.float32)

    p = params_ref[...]                     # (3, TN): bias / gamma / beta
    bias = p[0:1, :]
    gamma = p[1:2, :]
    beta = p[2:3, :]

    # ---- activation: ReLU (bias add fused into the same VPU pass) ----
    y = jnp.maximum(y + bias, 0.0)

    # ---- norm: BatchNorm1d, training-mode batch statistics ----
    # Full batch is resident in this block, so the reduction is purely local.
    # One pass: sum and sum-of-squares; biased variance, clamped at 0.
    inv_n = 1.0 / y.shape[0]
    mean = jnp.sum(y, axis=0, keepdims=True) * inv_n
    mean_sq = jnp.sum(y * y, axis=0, keepdims=True) * inv_n
    var = jnp.maximum(mean_sq - mean * mean, 0.0)
    inv_std = jax.lax.rsqrt(var + BN_EPS)   # EUP slot -> essentially free

    # Folded affine: 2 full-tile VPU ops (mul, add) instead of 4.
    scale = inv_std * gamma
    shift = beta - mean * scale
    o_ref[...] = (y * scale + shift).astype(o_ref.dtype)


def _pick_tile_n(out_padded, n_batch, in_features, vmem_budget_bytes=24 << 20):
    """Largest lane-dense feature tile whose double-buffered resident set fits
    comfortably under the v7x scoped-VMEM default (conservative on all gens)."""
    for tn in (512, 384, 256, 128):
        if out_padded % tn != 0:
            continue
        resident = (
            2 * n_batch * in_features * 4      # x (double-buffered)
            + 2 * in_features * tn * 4         # W^T tile (double-buffered)
            + 2 * n_batch * tn * 4             # output tile (double-buffered)
            + 2 * 3 * tn * 4                   # packed bias/gamma/beta tile
        )
        if resident <= vmem_budget_bytes:
            return tn
    return LANE


def linear_block(x, w_t, b, gamma, beta):
    """Fused Linear -> ReLU -> BatchNorm1d (training-mode batch statistics).

    x:      (N, in_features) f32
    w_t:    (in_features, out_features) f32  -- weight transposed ONCE outside
            the hot path (PyTorch stores (out_features, in_features)).
    b, gamma, beta: (out_features,) f32
    """
    n, in_features = x.shape
    out_features = w_t.shape[1]

    # Pad feature axis to a multiple of 128 for lane-dense, unmasked stores.
    out_padded = ((out_features + LANE - 1) // LANE) * LANE
    pad = out_padded - out_features
    if pad:
        w_t = jnp.pad(w_t, ((0, 0), (0, pad)))
        b = jnp.pad(b, (0, pad))
        gamma = jnp.pad(gamma, (0, pad), constant_values=1.0)
        beta = jnp.pad(beta, (0, pad))

    # Pack per-feature vectors into one array -> one small DMA per grid step.
    params = jnp.stack([b, gamma, beta], axis=0)   # (3, out_padded)

    tn = _pick_tile_n(out_padded, n, in_features)
    grid = (out_padded // tn,)

    out = pl.pallas_call(
        _linear_block_kernel,
        out_shape=jax.ShapeDtypeStruct((n, out_padded), jnp.float32),
        grid=grid,
        in_specs=[
            # Full batch resident (required: BN reduces over the batch axis).
            pl.BlockSpec((n, in_features), lambda j: (0, 0)),
            # Feature tile of W^T, double-buffered across the grid.
            pl.BlockSpec((in_features, tn), lambda j: (0, j)),
            # Packed bias / gamma / beta tile.
            pl.BlockSpec((3, tn), lambda j: (0, j)),
        ],
        out_specs=pl.BlockSpec((n, tn), lambda j: (0, j)),
        compiler_params=pltpu.CompilerParams(
            # Feature tiles are fully independent -> shard across v7x's 2 TCs.
            dimension_semantics=("parallel",),
        ),
    )(x, w_t, params)

    if pad:
        out = out[:, :out_features]
    return out


if __name__ == "__main__":
    # Small shapes consistent with the module: batch=8, in_features=32, out_features=64.
    N, IN_F, OUT_F = 8, 32, 64

    key = jax.random.PRNGKey(0)
    kx, kw, kb = jax.random.split(key, 3)

    x = jax.random.normal(kx, (N, IN_F), dtype=jnp.float32)

    # Deterministic parameter init of matching shape/scale.
    bound = 1.0 / (IN_F ** 0.5)
    w = jax.random.uniform(kw, (OUT_F, IN_F), minval=-bound, maxval=bound, dtype=jnp.float32)
    b = jax.random.uniform(kb, (OUT_F,), minval=-bound, maxval=bound, dtype=jnp.float32)
    gamma = jnp.ones((OUT_F,), dtype=jnp.float32)   # BatchNorm1d weight init
    beta = jnp.zeros((OUT_F,), dtype=jnp.float32)   # BatchNorm1d bias init

    # Transpose ONCE, outside the per-call hot path (no per-call HBM round-trip).
    w_t = jnp.asarray(w.T)

    out = jax.jit(linear_block)(x, w_t, b, gamma, beta)
    out = jax.block_until_ready(out)

    # Reference in plain JAX (PyTorch training-mode BN semantics).
    y_ref = jnp.maximum(x @ w.T + b, 0.0)
    m = jnp.mean(y_ref, axis=0, keepdims=True)
    v = jnp.mean((y_ref - m) ** 2, axis=0, keepdims=True)
    y_ref = (y_ref - m) * jax.lax.rsqrt(v + BN_EPS) * gamma + beta
    assert jnp.allclose(out, y_ref, atol=1e-5, rtol=1e-5)

    print("KERNEL_OK")
</pallas_src>

<mosaic_0001>
module attributes {stable_mosaic.version = 11 : i64} {
  func.func @_linear_block_kernel(%arg0: i32, %arg1: memref<8x32xf32, #tpu.memory_space<vmem>>, %arg2: memref<32x128xf32, #tpu.memory_space<vmem>>, %arg3: memref<3x128xf32, #tpu.memory_space<vmem>>, %arg4: memref<8x128xf32, #tpu.memory_space<vmem>>) attributes {dimension_semantics = [#tpu.dimension_semantics<parallel>], iteration_bounds = array<i64: 1>, scalar_prefetch = 0 : i64, scratch_operands = 0 : i64, tpu.core_type = #tpu.core_type<tc>, window_params = [{pipeline_mode = #tpu.pipeline_mode<synchronous>, transform_indices = @transform_0, window_bounds = array<i64: 8, 32>}, {transform_indices = @transform_1, window_bounds = array<i64: 32, 128>}, {transform_indices = @transform_2, window_bounds = array<i64: 3, 128>}, {transform_indices = @transform_3, window_bounds = array<i64: 8, 128>}]} {
    %c0 = arith.constant 0 : index
    %c0_0 = arith.constant 0 : index
    %0 = vector.load %arg1[%c0, %c0_0] : memref<8x32xf32, #tpu.memory_space<vmem>>, vector<8x32xf32>
    %c0_1 = arith.constant 0 : index
    %c0_2 = arith.constant 0 : index
    %1 = vector.load %arg2[%c0_1, %c0_2] : memref<32x128xf32, #tpu.memory_space<vmem>>, vector<32x128xf32>
    %cst = arith.constant dense<0.000000e+00> : vector<8x128xf32>
    %2 = tpu.matmul %0, %1, %cst {dimension_numbers = #tpu.dot_dimension_numbers<[1], [0], [0], [1], [0, 0, 1, 1], [], []>} : vector<8x32xf32>, vector<32x128xf32>, vector<8x128xf32> -> vector<8x128xf32>
    %c0_3 = arith.constant 0 : index
    %c0_4 = arith.constant 0 : index
    %3 = vector.load %arg3[%c0_3, %c0_4] : memref<3x128xf32, #tpu.memory_space<vmem>>, vector<3x128xf32>
    %4 = vector.extract_strided_slice %3 {offsets = [0, 0], sizes = [1, 128], strides = [1, 1]} : vector<3x128xf32> to vector<1x128xf32>
    %5 = vector.extract_strided_slice %3 {offsets = [1, 0], sizes = [1, 128], strides = [1, 1]} : vector<3x128xf32> to vector<1x128xf32>
    %6 = vector.extract_strided_slice %3 {offsets = [2, 0], sizes = [1, 128], strides = [1, 1]} : vector<3x128xf32> to vector<1x128xf32>
    %7 = vector.broadcast %4 : vector<1x128xf32> to vector<8x128xf32>
    %8 = arith.addf %2, %7 : vector<8x128xf32>
    %cst_5 = arith.constant 0.000000e+00 : f32
    %9 = vector.broadcast %cst_5 : f32 to vector<8x128xf32>
    %10 = arith.maximumf %8, %9 : vector<8x128xf32>
    %cst_6 = arith.constant dense<0.000000e+00> : vector<128xf32>
    %11 = vector.multi_reduction <add>, %10, %cst_6 [0] : vector<8x128xf32> to vector<128xf32>
    %12 = vector.shape_cast %11 : vector<128xf32> to vector<1x128xf32>
    %cst_7 = arith.constant 1.250000e-01 : f32
    %13 = vector.broadcast %cst_7 : f32 to vector<1x128xf32>
    %14 = arith.mulf %12, %13 : vector<1x128xf32>
    %15 = arith.mulf %10, %10 : vector<8x128xf32>
    %cst_8 = arith.constant dense<0.000000e+00> : vector<128xf32>
    %16 = vector.multi_reduction <add>, %15, %cst_8 [0] : vector<8x128xf32> to vector<128xf32>
    %17 = vector.shape_cast %16 : vector<128xf32> to vector<1x128xf32>
    %cst_9 = arith.constant 1.250000e-01 : f32
    %18 = vector.broadcast %cst_9 : f32 to vector<1x128xf32>
    %19 = arith.mulf %17, %18 : vector<1x128xf32>
    %20 = arith.mulf %14, %14 : vector<1x128xf32>
    %21 = arith.subf %19, %20 : vector<1x128xf32>
    %cst_10 = arith.constant 0.000000e+00 : f32
    %22 = vector.broadcast %cst_10 : f32 to vector<1x128xf32>
    %23 = arith.maximumf %21, %22 : vector<1x128xf32>
    %cst_11 = arith.constant 9.99999974E-6 : f32
    %24 = vector.broadcast %cst_11 : f32 to vector<1x128xf32>
    %25 = arith.addf %23, %24 : vector<1x128xf32>
    %26 = math.rsqrt %25 : vector<1x128xf32>
    %27 = arith.mulf %26, %5 : vector<1x128xf32>
    %28 = arith.mulf %14, %27 : vector<1x128xf32>
    %29 = arith.subf %6, %28 : vector<1x128xf32>
    %30 = vector.broadcast %27 : vector<1x128xf32> to vector<8x128xf32>
    %31 = arith.mulf %10, %30 : vector<8x128xf32>
    %32 = vector.broadcast %29 : vector<1x128xf32> to vector<8x128xf32>
    %33 = arith.addf %31, %32 : vector<8x128xf32>
    %c0_12 = arith.constant 0 : index
    %c0_13 = arith.constant 0 : index
    %34 = vector.load %arg4[%c0_12, %c0_13] : memref<8x128xf32, #tpu.memory_space<vmem>>, vector<8x128xf32>
    tpu.vector_store %arg4[%c0_12, %c0_13], %33 {strides = array<i32>} : memref<8x128xf32, #tpu.memory_space<vmem>>, vector<8x128xf32>,
    return
  }
  func.func @transform_0(%arg0: i32) -> (i32, i32) {
    %c0_i32 = arith.constant 0 : i32
    %c0_i32_0 = arith.constant 0 : i32
    %c0_i32_1 = arith.constant 0 : i32
    return %c0_i32, %c0_i32_0 : i32, i32
  }
  func.func @transform_1(%arg0: i32) -> (i32, i32) {
    %c0_i32 = arith.constant 0 : i32
    %c0_i32_0 = arith.constant 0 : i32
    return %c0_i32, %arg0 : i32, i32
  }
  func.func @transform_2(%arg0: i32) -> (i32, i32) {
    %c0_i32 = arith.constant 0 : i32
    %c0_i32_0 = arith.constant 0 : i32
    return %c0_i32, %arg0 : i32, i32
  }
  func.func @transform_3(%arg0: i32) -> (i32, i32) {
    %c0_i32 = arith.constant 0 : i32
    %c0_i32_0 = arith.constant 0 : i32
    return %c0_i32, %arg0 : i32, i32
  }
}

</mosaic_0001>

<bundles_post_ra>
// kernel: linear_block.1
= control target key start
LH: loop header
LB: loop body
LE: loop exit
PB: predicated region body
PF: predicated region fallthrough
CT: control target
= control target key end

     0   :  { %v204_v3 = vmov 0.0|0.0   ;;  %vm205_vm0 = vmmov 0   ;;  %v206_v6 = vmov 0.0   ;;  %s258_s0 = inlined_call_operand.vmem [shape: f32[8,32], index: 0, kind: input, shape index: {}]   ;;  %s259_s1 = inlined_call_operand.vmem [shape: f32[32,128], index: 1, kind: input, shape index: {}]   ;;  %s260_s2 = inlined_call_operand.vmem [shape: f32[3,128], index: 2, kind: input, shape index: {}]   ;;  %s261_s3 = inlined_call_operand.hbm [shape: f32[8,128], index: 3, kind: output, shape index: {}]  }
   0x1   :  { %v16_v0 = vld [vmem:[%s259_s1] sm:$0xff]  ;;  %v17_v1 = vld [vmem:[%s259_s1 + $0x8] sm:$0xff]  ;;  %v18_v2 = vld [vmem:[%s259_s1 + $0x10] sm:$0xff]  ;;  %168 = vmatprep.subr.bf16.mxu0 %v204_v3  ;;  %165 = vmatprep.mubr.msk.f32.mxu0 %vm205_vm0, %v206_v6 }
   0x2   :  { %v169_v4 = vpack.c.bf16 %v17_v1, %v16_v0  ;;  %v19_v5 = vld [vmem:[%s259_s1 + $0x18] sm:$0xff] }
   0x3   :  { %8 = vsyncpa [#allocation3], 0  ;;  %v172_v7 = vpack.c.bf16 %v19_v5, %v18_v2  ;;  %v15_v8 = vld [vmem:[%s258_s0] sm:$0xff]  ;;  %vm25_vm1 = vcmask 261120   ;;  %v21_v9 = vlaneseq  ;;  %s207_s0 = smov [#allocation2]  }
   0x4   :  { %170 = vmatpush3.bf16.msra.mxu0 %v169_v4  ;;  %v20_v12 = vld [vmem:[%s260_s2] sm:$0x7]  ;;  %s143_s1 = sshll.u32 %s207_s0, 4  ;;  %s144_s1 = int_to_ptr.vmem [resolvable:$true] %s143_s1 }
   0x5   :  { %171 = vmatprep.subr.bf16.mxu0 %v204_v3  ;;  %v22_v10 = vshrl.u32 %v21_v9, 7  ;;  %s180_s2 = scalar_lea.vmem %s144_s1, 128  ;;  %p185_p1 = scmp.lt.s32.totalorder %s144_s1, %s144_s1 }
   0x6   :  { %p181_p0 = scmp.ne.s32.totalorder %s144_s1, %s180_s2  ;;  %p186_p2 = scmp.lt.s32.totalorder %s180_s2, %s180_s2 }
   0x7   :  { %v23_v11 = vsub.s32 0, %v22_v10  ;;  %v128_v39 = vsub.s32 1, %v22_v10  ;;  %v133_v43 = vsub.s32 2, %v22_v10 }
   0x8   :  { %173 = vmatpush3.bf16.msra.mxu0 %v172_v7  ;;  %p187_p3 = por %p186_p2, %p185_p1 }
   0x9   :  { %v24_v13 = vrot.slane %v20_v12, %v23_v11 }
   0xa   :  { %p188_p4 = pnand %p187_p3, %p181_p0 }
   0xb   :  { %166 = vmatmul.mubr.msk.f32.vlgmr.msra.gmra.mrb[0].mxu0 %vm25_vm1, %v15_v8 }
  0xde   :  { %v95_v14 = vpop.f32.mrb[0].mxu0 }
  0xdf   :  { %v96_v15 = vadd.f32 %v95_v14, %v24_v13  ;;  %v167_v16 = vpop.f32.mrb[1].mxu0 }
  0xe1   :  { %v99_v17 = vmax.f32 %v96_v15, 0.0 }
  0xe3   :  { %v100_v18 = vrot.slane %v99_v17, 4  ;;  %v107_v19 = vmul.f32 %v99_v17, %v99_v17 }
  0xe5   :  { %v101_v20 = vadd.f32 %v100_v18, %v99_v17  ;;  %v108_v21 = vrot.slane %v107_v19, 4 }
  0xe7   :  { %v102_v22 = vrot.slane %v101_v20, 2  ;;  %v109_v23 = vadd.f32 %v108_v21, %v107_v19 }
  0xe9   :  { %v103_v24 = vadd.f32 %v102_v22, %v101_v20  ;;  %v110_v25 = vrot.slane %v109_v23, 2 }
  0xeb   :  { %v104_v26 = vrot.slane %v103_v24, 1  ;;  %v111_v27 = vadd.f32 %v110_v25, %v109_v23 }
  0xed   :  { %v105_v28 = vadd.f32 %v104_v26, %v103_v24  ;;  %v112_v29 = vrot.slane %v111_v27, 1 }
  0xef   :  { %v106_v30 = vmul.f32 0.125, %v105_v28  ;;  %v113_v31 = vadd.f32 %v112_v29, %v111_v27 }
  0xf1   :  { %v114_v32 = vmul.f32 0.125, %v113_v31  ;;  %v115_v33 = vmul.f32 %v106_v30, %v106_v30 }
  0xf3   :  { %v116_v34 = vsub.f32 %v114_v32, %v115_v33 }
  0xf5   :  { %v117_v35 = vmax.f32 %v116_v34, 0.0 }
  0xf7   :  { %v118_v36 = vadd.f32 1e-05, %v117_v35 }
  0xf9   :  { %178 = vrsqrt.f32 %v118_v36 }
 0x103   :  { %v179_v37 = vpop.eup %178 }
 0x104   :  { %v120_v38 = vmul.f32 %v179_v37, %v20_v12 }
 0x106   :  { %v121_v40 = vmul.f32 %v120_v38, %v106_v30  ;;  %v129_v42 = vrot.slane %v120_v38, %v128_v39 }
 0x108   :  { %v123_v41 = vrot.slane %v121_v40, 7  ;;  %v130_v45 = vmul.f32 %v129_v42, %v99_v17 }
 0x10a   :  { %v125_v44 = vsub.f32 %v20_v12, %v123_v41 }
 0x10c   :  { %v134_v46 = vrot.slane %v125_v44, %v133_v43 }
 0x10e   :  { %v135_v47 = vadd.f32 %v134_v46, %v130_v45 }
 0x110   :  { %136 = vst [vmem:[#allocation2] sm:$0xff] %v135_v47 }
 0x111   :  { %191 = shalt.err (!%p188_p4)
}
 0x112   :  { %s192_s26 = scalar_lea.hbm %s261_s3, 128 }
 0x113   :  { %p193_p5 = scmp.ne.s32.totalorder %s261_s3, %s192_s26  ;;  %p196_p6 = scmp.lt.u32.totalorder %s192_s26, %s261_s3 }
 0x115   :  { %p198_p7 = pnand %p196_p6, %p193_p5 }
 0x117   :  { %201 = shalt.err (!%p198_p7)
}
 0x118   :  { %146 = dma.vmem_to_hbm [thread:$0]  %s144_s1, 128, %s261_s3, [#allocation3]  }
 0x119   :  { %202 = dma.done.wait [#allocation3], 128  }
 0x11a   :  { %203 = vsyncadd [#allocation3], 4294967168 }
 0x11b   :  { %150 = vsyncpa [#allocation3], 1 }

</bundles_post_ra>
